<compile_context>
chip_gen: v7x
topology: tpu7x:2x2x1
jax: 0.10.0
libtpu: 0.0.40
codegen_flags: <defaults>
</compile_context>

<pallas_src>
import functools

import jax
import jax.numpy as jnp
from jax.experimental import pallas as pl
from jax.experimental.pallas import tpu as pltpu

LANES = 128
ACC_ROWS = 32          # resident accumulator height (4 f32 vreg sublane-groups)
MAX_ROW_TILE = 4096    # 4096 x 128 f32 = 2 MiB / block (4 MiB double-buffered)
NUM_SPLITS = 2         # leading "parallel" axis -> sharded across TCs on v7x
TILE_UNIT = 32         # multiple of sublane packing for f32/bf16/int8 and ACC_ROWS


def _round_up(a, b):
    return ((a + b - 1) // b) * b


def _sparse_loss_kernel(x_ref, o_ref, *, row_tile, n_inner, total_rows, ragged):
    c = pl.program_id(0)   # core / split index
    i = pl.program_id(1)   # sequential reduction step within this split

    # Accumulator = this split's (ACC_ROWS, 128) output block, resident across
    # the whole inner (arbitrary) axis since its index_map only depends on c.
    @pl.when(i == 0)
    def _():
        o_ref[...] = jnp.zeros_like(o_ref)

    groups = row_tile // ACC_ROWS

    def accumulate(valid_rows):
        a = jnp.abs(x_ref[...].astype(jnp.float32))
        if valid_rows is not None:
            # Rows past the end of the array (ragged final tile, or a clamped
            # duplicate tile on the second split) contribute zero.
            row_idx = jax.lax.broadcasted_iota(jnp.int32, (row_tile, LANES), 0)
            a = jnp.where(row_idx < valid_rows, a, 0.0)
        # A few independent ACC_ROWS-high partial sums -> short add chains,
        # keeps the VPU off the critical path (DMA stays the binding slot).
        o_ref[...] += jnp.sum(a.reshape(groups, ACC_ROWS, LANES), axis=0)

    if ragged:
        valid_rows = total_rows - (c * n_inner + i) * row_tile

        @pl.when(valid_rows >= row_tile)    # hot path: full tile, no mask work
        def _():
            accumulate(None)

        @pl.when(valid_rows < row_tile)     # final / duplicated tile only
        def _():
            accumulate(valid_rows)
    else:
        accumulate(None)


def sparse_loss(x):
    """mean(|x|) over all elements of x (any shape) == SparseLoss.forward."""
    n_elems = x.size
    if n_elems == 0:
        # Matches torch L1Loss / mean over an empty tensor.
        return jnp.float32(jnp.nan)

    flat = jnp.ravel(x)  # contiguous reshape: free; keep native dtype

    # No pad copy: handle the sub-128-element tail (if any) in plain JAX.
    rem = n_elems % LANES
    main = n_elems - rem
    tail = (jnp.sum(jnp.abs(flat[main:].astype(jnp.float32)))
            if rem else jnp.float32(0.0))
    inv_n = jnp.float32(1.0 / float(n_elems))
    if main == 0:
        return tail * inv_n

    total_rows = main // LANES
    x2d = (flat[:main] if rem else flat).reshape(total_rows, LANES)

    # Largest tile that fits comfortably: amortizes per-step overhead; TILE_UNIT
    # keeps the sublane dim legal for any input dtype and divisible by ACC_ROWS.
    row_tile = min(MAX_ROW_TILE, _round_up(total_rows, TILE_UNIT))
    n_tiles = pl.cdiv(total_rows, row_tile)

    # Split the tile range across NUM_SPLITS (parallel axis): 2 DMA streams on
    # v7x, a negligible serial outer loop on 1-TC chips.
    n_inner = pl.cdiv(n_tiles, NUM_SPLITS)
    virt_tiles = NUM_SPLITS * n_inner
    ragged = (total_rows % row_tile != 0) or (virt_tiles != n_tiles)

    if virt_tiles == n_tiles:
        in_index_map = lambda c, i: (c * n_inner + i, 0)
    else:
        last_tile = n_tiles - 1
        # Clamp duplicated trailing tiles into range; the kernel masks them to 0.
        in_index_map = lambda c, i: (jnp.minimum(c * n_inner + i, last_tile), 0)

    kernel = functools.partial(
        _sparse_loss_kernel,
        row_tile=row_tile,
        n_inner=n_inner,
        total_rows=total_rows,
        ragged=ragged,
    )

    partials = pl.pallas_call(
        kernel,
        out_shape=jax.ShapeDtypeStruct((NUM_SPLITS, ACC_ROWS, LANES), jnp.float32),
        grid_spec=pltpu.PrefetchScalarGridSpec(
            num_scalar_prefetch=0,
            grid=(NUM_SPLITS, n_inner),
            in_specs=[pl.BlockSpec((row_tile, LANES), in_index_map)],
            # Per-split resident accumulator block (leading dim squeezed).
            out_specs=pl.BlockSpec((None, ACC_ROWS, LANES), lambda c, i: (c, 0, 0)),
        ),
        compiler_params=pltpu.CompilerParams(
            # Split axis shards across TensorCores on v7x; inner axis is the
            # sequential reduction. Blocks (<=4 MiB double-buffered) fit under
            # the default scoped-VMEM limit on every generation.
            dimension_semantics=("parallel", "arbitrary"),
        ),
        cost_estimate=pl.CostEstimate(
            flops=2 * main,
            transcendentals=0,
            bytes_accessed=main * x.dtype.itemsize
            + NUM_SPLITS * ACC_ROWS * LANES * 4,
        ),
        # TODO(synk): sweep pipeline_mode=pl.Buffered(3) on the input spec for
        # v7x once measured on hardware (low-priority polish).
    )(x2d)

    # Tiny final collapse (2 x 32 x 128 f32) + mean scale in plain JAX.
    return (jnp.sum(partials) + tail) * inv_n


if __name__ == "__main__":
    key = jax.random.PRNGKey(0)
    # Input shape consistent with a small conv feature map (NCHW): (2, 4, 16, 16)
    x = jax.random.normal(key, (2, 4, 16, 16), dtype=jnp.float32)

    loss = sparse_loss(x)
    jax.block_until_ready(loss)

    # Sanity check vs. pure-JAX reference of the PyTorch forward.
    ref = jnp.mean(jnp.abs(x))
    assert jnp.allclose(loss, ref, rtol=1e-5, atol=1e-6), (loss, ref)

    print("KERNEL_OK")
</pallas_src>

<mosaic_0001>
module attributes {stable_mosaic.version = 11 : i64} {
  func.func @_sparse_loss_kernel(%arg0: i32, %arg1: i32, %arg2: memref<32x128xf32, #tpu.memory_space<vmem>>, %arg3: memref<1x32x128xf32, #tpu.memory_space<vmem>>) attributes {dimension_semantics = [#tpu.dimension_semantics<parallel>, #tpu.dimension_semantics<arbitrary>], iteration_bounds = array<i64: 2, 1>, scalar_prefetch = 0 : i64, scratch_operands = 0 : i64, tpu.core_type = #tpu.core_type<tc>, window_params = [{transform_indices = @transform_0, window_bounds = array<i64: 32, 128>}, {transform_indices = @transform_1, window_bounds = array<i64: 1, 32, 128>}]} {
    %c0_i32 = arith.constant 0 : i32
    %0 = arith.cmpi eq, %arg1, %c0_i32 : i32
    %1 = arith.extui %0 : i1 to i32
    %c0_i32_0 = arith.constant 0 : i32
    %2 = arith.cmpi ne, %1, %c0_i32_0 : i32
    scf.if %2 {
      %cst = arith.constant 0.000000e+00 : f32
      %13 = vector.broadcast %cst : f32 to vector<32x128xf32>
      %c0 = arith.constant 0 : index
      %c0_5 = arith.constant 0 : index
      %c0_6 = arith.constant 0 : index
      %14 = vector.load %arg3[%c0, %c0_5, %c0_6] : memref<1x32x128xf32, #tpu.memory_space<vmem>>, vector<1x32x128xf32>
      %15 = vector.shape_cast %14 : vector<1x32x128xf32> to vector<32x128xf32>
      %16 = vector.shape_cast %13 : vector<32x128xf32> to vector<1x32x128xf32>
      tpu.vector_store %arg3[%c0, %c0_5, %c0_6], %16 {strides = array<i32>} : memref<1x32x128xf32, #tpu.memory_space<vmem>>, vector<1x32x128xf32>,
    } else {
    }
    %c1_i32 = arith.constant 1 : i32
    %3 = arith.muli %arg0, %c1_i32 : i32
    %4 = arith.addi %3, %arg1 : i32
    %c32_i32 = arith.constant 32 : i32
    %5 = arith.muli %4, %c32_i32 : i32
    %c16_i32 = arith.constant 16 : i32
    %6 = arith.subi %c16_i32, %5 : i32
    %c32_i32_1 = arith.constant 32 : i32
    %7 = arith.cmpi sge, %6, %c32_i32_1 : i32
    %8 = arith.extui %7 : i1 to i32
    %c0_i32_2 = arith.constant 0 : i32
    %9 = arith.cmpi ne, %8, %c0_i32_2 : i32
    scf.if %9 {
      %c0 = arith.constant 0 : index
      %c0_5 = arith.constant 0 : index
      %13 = vector.load %arg2[%c0, %c0_5] : memref<32x128xf32, #tpu.memory_space<vmem>>, vector<32x128xf32>
      %14 = math.absf %13 : vector<32x128xf32>
      %c0_6 = arith.constant 0 : index
      %c0_7 = arith.constant 0 : index
      %c0_8 = arith.constant 0 : index
      %15 = vector.load %arg3[%c0_6, %c0_7, %c0_8] : memref<1x32x128xf32, #tpu.memory_space<vmem>>, vector<1x32x128xf32>
      %16 = vector.shape_cast %15 : vector<1x32x128xf32> to vector<32x128xf32>
      %17 = vector.shape_cast %14 : vector<32x128xf32> to vector<1x32x128xf32>
      %cst = arith.constant dense<0.000000e+00> : vector<32x128xf32>
      %18 = vector.multi_reduction <add>, %17, %cst [0] : vector<1x32x128xf32> to vector<32x128xf32>
      %19 = arith.addf %16, %18 : vector<32x128xf32>
      %c0_9 = arith.constant 0 : index
      %c0_10 = arith.constant 0 : index
      %c0_11 = arith.constant 0 : index
      %20 = vector.load %arg3[%c0_9, %c0_10, %c0_11] : memref<1x32x128xf32, #tpu.memory_space<vmem>>, vector<1x32x128xf32>
      %21 = vector.shape_cast %20 : vector<1x32x128xf32> to vector<32x128xf32>
      %22 = vector.shape_cast %19 : vector<32x128xf32> to vector<1x32x128xf32>
      tpu.vector_store %arg3[%c0_9, %c0_10, %c0_11], %22 {strides = array<i32>} : memref<1x32x128xf32, #tpu.memory_space<vmem>>, vector<1x32x128xf32>,
    } else {
    }
    %c32_i32_3 = arith.constant 32 : i32
    %10 = arith.cmpi slt, %6, %c32_i32_3 : i32
    %11 = arith.extui %10 : i1 to i32
    %c0_i32_4 = arith.constant 0 : i32
    %12 = arith.cmpi ne, %11, %c0_i32_4 : i32
    scf.if %12 {
      %c0 = arith.constant 0 : index
      %c0_5 = arith.constant 0 : index
      %13 = vector.load %arg2[%c0, %c0_5] : memref<32x128xf32, #tpu.memory_space<vmem>>, vector<32x128xf32>
      %14 = math.absf %13 : vector<32x128xf32>
      %15 = tpu.iota {dimensions = array<i32: 0>} : vector<32x128xi32>
      %16 = vector.broadcast %6 : i32 to vector<32x128xi32>
      %17 = arith.cmpi slt, %15, %16 : vector<32x128xi32>
      %cst = arith.constant 0.000000e+00 : f32
      %18 = vector.broadcast %cst : f32 to vector<32x128xf32>
      %19 = arith.select %17, %14, %18 : vector<32x128xi1>, vector<32x128xf32>
      %c0_6 = arith.constant 0 : index
      %c0_7 = arith.constant 0 : index
      %c0_8 = arith.constant 0 : index
      %20 = vector.load %arg3[%c0_6, %c0_7, %c0_8] : memref<1x32x128xf32, #tpu.memory_space<vmem>>, vector<1x32x128xf32>
      %21 = vector.shape_cast %20 : vector<1x32x128xf32> to vector<32x128xf32>
      %22 = vector.shape_cast %19 : vector<32x128xf32> to vector<1x32x128xf32>
      %cst_9 = arith.constant dense<0.000000e+00> : vector<32x128xf32>
      %23 = vector.multi_reduction <add>, %22, %cst_9 [0] : vector<1x32x128xf32> to vector<32x128xf32>
      %24 = arith.addf %21, %23 : vector<32x128xf32>
      %c0_10 = arith.constant 0 : index
      %c0_11 = arith.constant 0 : index
      %c0_12 = arith.constant 0 : index
      %25 = vector.load %arg3[%c0_10, %c0_11, %c0_12] : memref<1x32x128xf32, #tpu.memory_space<vmem>>, vector<1x32x128xf32>
      %26 = vector.shape_cast %25 : vector<1x32x128xf32> to vector<32x128xf32>
      %27 = vector.shape_cast %24 : vector<32x128xf32> to vector<1x32x128xf32>
      tpu.vector_store %arg3[%c0_10, %c0_11, %c0_12], %27 {strides = array<i32>} : memref<1x32x128xf32, #tpu.memory_space<vmem>>, vector<1x32x128xf32>,
    } else {
    }
    return
  }
  func.func @transform_0(%arg0: i32, %arg1: i32) -> (i32, i32) {
    %c1_i32 = arith.constant 1 : i32
    %0 = arith.muli %arg0, %c1_i32 : i32
    %1 = arith.addi %0, %arg1 : i32
    %c0_i32 = arith.constant 0 : i32
    %2 = arith.minsi %1, %c0_i32 : i32
    %c0_i32_0 = arith.constant 0 : i32
    %c0_i32_1 = arith.constant 0 : i32
    return %2, %c0_i32_0 : i32, i32
  }
  func.func @transform_1(%arg0: i32, %arg1: i32) -> (i32, i32, i32) {
    %c0_i32 = arith.constant 0 : i32
    %c0_i32_0 = arith.constant 0 : i32
    %c0_i32_1 = arith.constant 0 : i32
    return %arg0, %c0_i32, %c0_i32_0 : i32, i32, i32
  }
}

</mosaic_0001>

<bundles_post_ra>
// kernel: tpu_custom_call.1
= control target key start
LH: loop header
LB: loop body
LE: loop exit
PB: predicated region body
PF: predicated region fallthrough
CT: control target
= control target key end

     0   :  { %6 = vsyncpa [#allocation3], 0  ;;  %s803_s0 = inlined_call_operand.hbm [shape: f32[16,128], index: 0, kind: input, shape index: {}]   ;;  %s804_s1 = inlined_call_operand.hbm [shape: f32[2,32,128], index: 1, kind: output, shape index: {}]  }
   0x1   :  { %8 = vsyncpa [#allocation3 + $0x1], 0 }
   0x2   :  { %9 = vsyncpa [#allocation4], 0 }
   0x3   :  { %11 = vsyncpa [#allocation4 + $0x1], 0  ;;  %s603_s6 = smov 0   ;;  %s605_s7 = smov 0  }
   0x4   :  { %s607_s8 = smov 0   ;;  %s609_s9 = smov 0  }
   0x5   :  { %s611_s10 = smov 0   ;;  %s613_s11 = smov 0  }
   0x6   :  { %s615_s12 = smov 0   ;;  %s617_s13 = smov 0  }
   0x7 LB: > { %s342_s14 = sadd.s32 4294967295, %s584_s13   ;;  %s343_s15 = sadd.s32 4294967294, %s584_s13   ;;  %s584_s13 = sphi %s617_s13, %s17_s13   ;;  %s580_s12 = sphi %s615_s12, %s814_s12   ;;  %s576_s11 = sphi %s613_s11, %s813_s11   ;;  %s572_s10 = sphi %s611_s10, %s793_s10   ;;  %s568_s9 = sphi %s609_s9, %s812_s9   ;;  %s564_s8 = sphi %s607_s8, %s811_s8   ;;  %s560_s7 = sphi %s605_s7, %s810_s7   ;;  %s556_s6 = sphi %s603_s6, %s809_s6  }
   0x8   : > { %s29_s16 = sadd.s32 1, %s580_s12  ;;  %p553_p1 = scmp.ne.s32.totalorder %s572_s10, 0 }
   0x9   : > { %p31_p0 = scmp.ge.s32.totalorder %s29_s16, 2  ;;  %p50_p2 = scmp.eq.s32.totalorder %s584_s13, 0 }
   0xa   : > { %p55_p3 = scmp.ne.s32.totalorder %s572_s10, %s568_s9  ;;  %p56_p5 = scmp.eq.s32.totalorder %s342_s14, 0 }
   0xb   : > { %s816_s16 = smov (%p31_p0, %s29_s16), 0  ;;  %p649_p4 = por %p553_p1, %p50_p2 }
   0xc   : > { %p653_p6 = por %p56_p5, %p55_p3  ;;  %s65_s19 = ssub.s32 %s580_s12, %s816_s16 }
   0xd   : > { %p66_p7 = scmp.eq.s32.totalorder %s65_s19, 0  ;;  %s68_s20 = sadd.s32 1, %s564_s8 }
   0xe   : > { %p78_p8 = scmp.ne.s32.totalorder %s564_s8, %s560_s7  ;;  %p79_p9 = scmp.eq.s32.totalorder %s342_s14, 1 }
   0xf   : > { %s661_s21 = scalar_select %p66_p7, %s564_s8, %s68_s20  }
  0x10   : > { %p84_p10 = scmp.ne.s32.totalorder %s560_s7, %s556_s6  ;;  %p85_p11 = scmp.eq.s32.totalorder %s343_s15, 1 }
  0x11   : > { %p667_p12 = por %p79_p9, %p78_p8  ;;  %p345_p0 = scmp.ge.s32.totalorder %s584_s13, 2 }
  0x12   : > { %p671_p13 = por %p85_p11, %p84_p10 }
  0x13   : > { %101 = sbr.rel (%p345_p0) target bundleno = 53 (0x35), region = 16 }
  0x1a   : > { %104 = sbr.rel (!%p649_p4) target bundleno = 53 (0x35), region = 20 }
  0x21   : > { %118 = vsyncadd [#allocation3], 256  ;;  %s586_s24 = smov [#allocation2]   ;;  %s451_s28 = scalar_lea.hbm %s803_s0, 256 }
  0x22   : > { %s123_s25 = sshll.u32 %s586_s24, 4  ;;  %p452_p1 = scmp.ne.s32.totalorder %s803_s0, %s451_s28  ;;  %s124_s25 = int_to_ptr.vmem [resolvable:$true] %s123_s25 }
  0x23   : > { %p457_p2 = scmp.lt.u32.totalorder %s451_s28, %s451_s28  ;;  %p459_p3 = scmp.lt.u32.totalorder %s451_s28, %s803_s0 }
  0x25   : > { %p460_p5 = por %p459_p3, %p457_p2 }
  0x27   : > { %p461_p7 = pnand %p460_p5, %p452_p1 }
  0x29   : > { %464 = shalt.err (!%p461_p7)
}
  0x2a   : > { %s465_s4 = scalar_lea.vmem %s124_s25, 256  ;;  %s471_s5 = scalar_lea.vmem %s124_s25, 1024 }
  0x2b   : > { %p466_p4 = scmp.ne.s32.totalorder %s124_s25, %s465_s4  ;;  %p472_p8 = scmp.lt.s32.totalorder %s124_s25, %s124_s25 }
  0x2c   : > { %p473_p9 = scmp.lt.s32.totalorder %s471_s5, %s465_s4 }
  0x2e   : > { %p474_p10 = por %p473_p9, %p472_p8 }
  0x30   : > { %p475_p11 = pnand %p474_p10, %p466_p4 }
  0x32   : > { %478 = shalt.err (!%p475_p11)
}
  0x33   : > { %s587_s9 = smov 128   ;;  %s588_s14 = smov 8  }
  0x34   : > { %129 = dma.hbm_to_vmem [thread:$0]  %s803_s0, 256, %s124_s25, [#allocation3], %s587_s9, %s587_s9, %s588_s14  }
  0x35 PF: > { %p353_p1 = scmp.ge.s32.totalorder %s584_s13, 1  ;;  %p131_p2 = scmp.lt.s32.totalorder %s584_s13, 3 }
  0x37   : > { %p132_p3 = pnand %p353_p1, %p131_p2 }
  0x38   : > { %s137_s19 = sand.u32 (!%p132_p3), 1, %s572_s10  }
  0x39   : > { %135 = sbr.rel (%p132_p3) target bundleno = 118 (0x76), region = 24  ;;  %s354_s20 = sshll.u32 (!%p132_p3), %s137_s19, 5 }
  0x3a   : > { %s138_s24 = scalar_lea.sflag (!%p132_p3), [#allocation3], %s137_s19  ;;  %s695_s26 = scalar_lea.vmem (!%p132_p3), [#allocation2], %s354_s20 }
  0x40   : > { %544 = dma.done.wait (%p653_p6), %s138_s24, 512  }
  0x41   : > { %546 = vsyncadd (%p653_p6), %s138_s24, 4294966784  ;;  %s157_s25 = sand.u32 1, %s560_s7   ;;  %s356_s27 = sshll.u32 %s576_s11, 5  ;;  %v589_v0 = vmov 0.0  }
  0x42   : > { %s355_s28 = sshll.u32 %s157_s25, 5  ;;  %s705_s29 = ssub.s32 16, %s356_s27 }
  0x43   : > { %s707_s30 = scalar_lea.vmem [#allocation5], %s355_s28  ;;  %p357_p6 = scmp.lt.s32.totalorder %s705_s29, 32 }
  0x44   : > { %170 = vst [vmem:[%s707_s30] sm:$0xff] %v589_v0  ;;  %171 = vst [vmem:[%s707_s30 + $0x8] sm:$0xff] %v589_v0  ;;  %v181_v1 = vld [vmem:[%s695_s26] sm:$0xff] (!%p357_p6)  ;;  %v182_v3 = vld [vmem:[%s695_s26 + $0x8] sm:$0xff] (!%p357_p6) }
  0x45   : > { %172 = vst [vmem:[%s707_s30 + $0x10] sm:$0xff] %v589_v0  ;;  %173 = vst [vmem:[%s707_s30 + $0x18] sm:$0xff] %v589_v0  ;;  %180 = sbr.rel (%p357_p6) target bundleno = 80 (0x50), region = 36  ;;  %v185_v4 = vand.u32 (!%p357_p6), 2147483647, %v181_v1  ;;  %v183_v7 = vld [vmem:[%s695_s26 + $0x10] sm:$0xff] (!%p357_p6) }
  0x46   : > { %v186_v5 = vand.u32 (!%p357_p6), 2147483647, %v182_v3  ;;  %v187_v8 = vand.u32 (!%p357_p6), 2147483647, %v183_v7  ;;  %v184_v10 = vld [vmem:[%s695_s26 + $0x18] sm:$0xff] (!%p357_p6) }
  0x47   : > { %v188_v14 = vand.u32 (!%p357_p6), 2147483647, %v184_v10 }
  0x4b   : > { %v189_v2 = vld [vmem:[%s707_s30] sm:$0xff] (!%p357_p6)  ;;  %v190_v6 = vld [vmem:[%s707_s30 + $0x8] sm:$0xff] (!%p357_p6) }
  0x4c   : > { %v191_v9 = vld [vmem:[%s707_s30 + $0x10] sm:$0xff]  ;;  %v192_v11 = vld [vmem:[%s707_s30 + $0x18] sm:$0xff]  ;;  %v197_v12 = vadd.f32 %v189_v2, %v185_v4  ;;  %v198_v13 = vadd.f32 %v190_v6, %v186_v5 }
  0x4d   : > { %v199_v15 = vadd.f32 %v191_v9, %v187_v8  ;;  %v200_v16 = vadd.f32 %v192_v11, %v188_v14 }
  0x4e   : > { %201 = vst [vmem:[%s707_s30] sm:$0xff] %v197_v12  ;;  %202 = vst [vmem:[%s707_s30 + $0x8] sm:$0xff] %v198_v13 }
  0x4f   : > { %203 = vst [vmem:[%s707_s30 + $0x10] sm:$0xff] %v199_v15  ;;  %204 = vst [vmem:[%s707_s30 + $0x18] sm:$0xff] %v200_v16 }
  0x50 PF: > { %p358_p5 = scmp.ge.s32.totalorder %s705_s29, 32 }
  0x51   : > { %v209_v17 = vld [vmem:[%s695_s26] sm:$0xff] (!%p358_p5)  ;;  %v217_v18 = vlaneseq (!%p358_p5)  ;;  %v210_v19 = vld [vmem:[%s695_s26 + $0x8] sm:$0xff] (!%p358_p5)  ;;  %v222_v21 = vstv (!%p358_p5), %s705_s29  ;;  %v211_v22 = vld [vmem:[%s695_s26 + $0x10] sm:$0xff] (!%p358_p5) }
  0x52   : > { %208 = sbr.rel (%p358_p5) target bundleno = 93 (0x5d), region = 40  ;;  %v213_v20 = vand.u32 (!%p358_p5), 2147483647, %v209_v17  ;;  %v212_v25 = vld [vmem:[%s695_s26 + $0x18] sm:$0xff] (!%p358_p5)  ;;  %v214_v26 = vand.u32 (!%p358_p5), 2147483647, %v210_v19 }
  0x53   : > { %v218_v23 = vshrl.u32 (!%p358_p5), %v217_v18, 7  ;;  %v215_v27 = vand.u32 (!%p358_p5), 2147483647, %v211_v22  ;;  %v216_v28 = vand.u32 (!%p358_p5), 2147483647, %v212_v25 }
  0x55   : > { %v231_v24 = vld [vmem:[%s707_s30] sm:$0xff] (!%p358_p5)  ;;  %vm223_vm0 = vcmp.lt.s32.totalorder (!%p358_p5), %v218_v23, %v222_v21  ;;  %v219_v29 = vadd.s32 (!%p358_p5), 8, %v218_v23  ;;  %v220_v30 = vadd.s32 (!%p358_p5), 16, %v218_v23  ;;  %v221_v31 = vadd.s32 (!%p358_p5), 24, %v218_v23  ;;  %v232_v33 = vld [vmem:[%s707_s30 + $0x8] sm:$0xff] (!%p358_p5) }
  0x56   : > { %v227_v32 = vsel (!%p358_p5), %vm223_vm0, %v213_v20, 0.0  ;;  %v233_v34 = vld [vmem:[%s707_s30 + $0x10] sm:$0xff] (!%p358_p5)  ;;  %v234_v35 = vld [vmem:[%s707_s30 + $0x18] sm:$0xff] (!%p358_p5) }
  0x57   : > { %v239_v36 = vadd.f32 (!%p358_p5), %v231_v24, %v227_v32  ;;  %vm224_vm1 = vcmp.lt.s32.totalorder (!%p358_p5), %v219_v29, %v222_v21  ;;  %vm225_vm2 = vcmp.lt.s32.totalorder (!%p358_p5), %v220_v30, %v222_v21  ;;  %vm226_vm3 = vcmp.lt.s32.totalorder (!%p358_p5), %v221_v31, %v222_v21 }
  0x58   : > { %v228_v37 = vsel (!%p358_p5), %vm224_vm1, %v214_v26, 0.0  ;;  %v229_v38 = vsel (!%p358_p5), %vm225_vm2, %v215_v27, 0.0  ;;  %v230_v39 = vsel (!%p358_p5), %vm226_vm3, %v216_v28, 0.0 }
  0x59   : > { %243 = vst [vmem:[%s707_s30] sm:$0xff] %v239_v36  ;;  %v240_v40 = vadd.f32 %v232_v33, %v228_v37  ;;  %v241_v41 = vadd.f32 %v233_v34, %v229_v38  ;;  %v242_v42 = vadd.f32 %v234_v35, %v230_v39 }
  0x5b   : > { %244 = vst [vmem:[%s707_s30 + $0x8] sm:$0xff] %v240_v40  ;;  %245 = vst [vmem:[%s707_s30 + $0x10] sm:$0xff] %v241_v41 }
  0x5c   : > { %246 = vst [vmem:[%s707_s30 + $0x18] sm:$0xff] %v242_v42 }
  0x5d PF: > { %s365_s18 = sshll.u32 %s576_s11, 9  ;;  %s261_s5 = sshll.u32 %s707_s30, 4  ;;  %s747_s5 = int_to_ptr.vmem [resolvable:$true] %s261_s5 }
  0x5e   : > { %s744_s4 = scalar_lea.hbm %s804_s1, %s365_s18  ;;  %s751_s9 = scalar_lea.sflag [#allocation4], %s157_s25 }
  0x5f   : > { %s479_s14 = scalar_lea.vmem %s747_s5, 512  ;;  %s590_s11 = smov [#allocation5]  }
  0x60   : > { %p480_p7 = scmp.ne.s32.totalorder %s747_s5, %s479_s14  ;;  %s483_s15 = sshll.u32 %s590_s11, 4  ;;  %s484_s15 = int_to_ptr.vmem [resolvable:$false] %s483_s15 }
  0x61   : > { %s485_s17 = scalar_lea.vmem %s484_s15, 1024  ;;  %p486_p9 = scmp.lt.s32.totalorder %s747_s5, %s484_s15 }
  0x62   : > { %p481_p4 = pnand %p480_p7, %p667_p12  ;;  %p487_p10 = scmp.lt.s32.totalorder %s485_s17, %s479_s14 }
  0x64   : > { %p482_p8 = pneg %p481_p4  ;;  %p488_p11 = por %p487_p10, %p486_p9 }
  0x66   : > { %p489_p1 = pnand %p488_p11, %p482_p8 }
  0x68   : > { %492 = shalt.err (!%p489_p1)
}
  0x69   : > { %s493_s19 = scalar_lea.hbm %s744_s4, 512  ;;  %s497_s26 = scalar_lea.hbm %s804_s1, 1024 }
  0x6a   : > { %p494_p2 = scmp.ne.s32.totalorder %s744_s4, %s493_s19  ;;  %p498_p5 = scmp.lt.u32.totalorder %s744_s4, %s804_s1 }
  0x6b   : > { %p499_p7 = scmp.lt.u32.totalorder %s497_s26, %s493_s19  ;;  %p501_p8 = scmp.lt.u32.totalorder %s493_s19, %s744_s4 }
  0x6c   : > { %p495_p3 = pnand %p494_p2, %p667_p12 }
  0x6d   : > { %p500_p4 = por %p499_p7, %p498_p5 }
  0x6e   : > { %p496_p6 = pneg %p495_p3 }
  0x6f   : > { %p502_p9 = por %p501_p8, %p500_p4 }
  0x71   : > { %p503_p10 = pnand %p502_p9, %p496_p6 }
  0x73   : > { %506 = shalt.err (!%p503_p10)
}
  0x74   : > { %s591_s28 = smov 128   ;;  %s592_s29 = smov 8  }
  0x75   : > { %367 = dma.vmem_to_hbm [thread:$0]  (%p667_p12), %s747_s5, 512, %s744_s4, %s751_s9, %s591_s28, %s591_s28, %s592_s29  }
  0x76 PF: > { %s276_s30 = sand.u32 1, %s556_s6   ;;  %p370_p11 = pnand %p345_p0, %p671_p13 }
  0x77   : > { %s277_s18 = scalar_lea.sflag [#allocation4], %s276_s30 }
  0x78   : > { %548 = dma.done.wait (!%p370_p11), %s277_s18, 512  }
  0x79   : > { %550 = vsyncadd (!%p370_p11), %s277_s18, 4294966784  ;;  %s17_s13 = sadd.s32 1, %s584_s13   ;;  %s809_s6 = smov %s560_s7 }
  0x7a   : > { %p14_p1 = scmp.ge.s32.totalorder %s17_s13, 4   ;;  %s810_s7 = smov %s564_s8 }
  0x7b   : > { %s811_s8 = smov %s661_s21  ;;  %s812_s9 = smov %s572_s10 }
  0x7c   : > { %s793_s10 = smov 0   ;;  %s813_s11 = smov %s580_s12 }
  0x7d   : > { %s814_s12 = smov %s816_s16  ;;  %16 = sbr.rel (!%p14_p1) target bundleno = 7 (0x7), region = 81 }
  0x84   :  { %282 = vsyncpa [#allocation3], 1 }
  0x85   :  { %284 = vsyncpa [#allocation3 + $0x1], 1 }
  0x86   :  { %285 = vsyncpa [#allocation4], 1 }
  0x87   :  { %287 = vsyncpa [#allocation4 + $0x1], 1 }

</bundles_post_ra>
